<compile_context>
chip_gen: v7x
topology: tpu7x:2x2x1
jax: 0.10.0
libtpu: 0.0.40
codegen_flags: <defaults>
</compile_context>

<pallas_src>
import functools

import jax
import jax.numpy as jnp
from jax.experimental import pallas as pl
from jax.experimental.pallas import tpu as pltpu


def mlp_kernel(x_ref, w1_ref, b1_ref, w2_ref, b2_ref,
               w3_ref, b3_ref, w4t_ref, b4_ref, o_ref, *, lane_chunk):
    # Load the tiny weights/biases once per grid step (few KiB total).
    w1 = w1_ref[...]; b1 = b1_ref[...]
    w2 = w2_ref[...]; b2 = b2_ref[...]
    w3 = w3_ref[...]; b3 = b3_ref[...]
    w4t = w4t_ref[...]; b4 = b4_ref[...]

    # Contract the feature axis of BOTH operands: W (out,in) . x (chunk,in)^T
    # -> (out, chunk).  The layout change rides the XLU inside the kernel.
    dn = (((1,), (1,)), ((), ()))

    bt = o_ref.shape[-1]              # static batch-tile width (lanes)
    n_chunks = bt // lane_chunk       # static trip count

    # Fully-unrolled static loop (equivalent to lax.fori_loop(unroll=True)):
    # intermediates stay chunk-sized so they never round-trip to VMEM at full
    # tile width.  Each chunk ends in a lane-dense store, ending live ranges.
    for c in range(n_chunks):
        lo = c * lane_chunk
        x_c = x_ref[lo:lo + lane_chunk, :]                           # (chunk, F)

        h = jax.lax.dot_general(w1, x_c, dn,
                                preferred_element_type=jnp.float32)  # (H, chunk)
        h = jnp.maximum(h + b1, 0.0).astype(w2.dtype)

        h = jnp.dot(w2, h, preferred_element_type=jnp.float32)       # (H/2, chunk)
        h = jnp.maximum(h + b2, 0.0).astype(w3.dtype)

        h = jnp.dot(w3, h, preferred_element_type=jnp.float32)       # (H/4, chunk)
        h = jnp.maximum(h + b3, 0.0)

        # Final (H/4 -> 1) layer: VPU broadcast-multiply + sublane reduce (XLU)
        # instead of a tiny, badly-utilized MXU matmul.
        y = jnp.sum(w4t.astype(jnp.float32) * h, axis=0, keepdims=True) + b4
        o_ref[:, lo:lo + lane_chunk] = jnp.maximum(y, 0.0).astype(o_ref.dtype)


def _vmem_capacity_bytes():
    """Physical VMEM per core; conservative v7x-style fallback (64 MiB)."""
    try:
        return int(pltpu.get_tpu_info().vmem_capacity_bytes)
    except Exception:
        return 64 * 1024 * 1024


def _num_tensorcores():
    """TensorCores a single Pallas grid can span via a 'parallel' axis."""
    try:
        kind = jax.devices()[0].device_kind.lower()
    except Exception:
        return 1
    if any(tag in kind for tag in ("v4", "v5p", "v7", "tpu7", "7x")):
        return 2          # megacore / dual-TC chips
    return 1              # v5e / v6e


def gp_nn_heuristic_forward(x, params, *, batch_tile=None, lane_chunk=512,
                            use_bf16=False):
    """x: (B, F) float32.  params: PyTorch-layout weights w (out,in), biases b (out,)."""
    B, F = x.shape
    w1, b1 = params["w1"], params["b1"]
    w2, b2 = params["w2"], params["b2"]
    w3, b3 = params["w3"], params["b3"]
    w4, b4 = params["w4"], params["b4"]
    H = w1.shape[0]

    QUANT = 512                      # tile quantum: multiple of 128 lanes and lane_chunk

    # ---- generation-aware tile sizing ------------------------------------
    x_item = 2 if use_bf16 else 4
    vmem_cap = _vmem_capacity_bytes()
    # ~48 MiB budget on 64-MiB-VMEM chips (v7x), up to 96 MiB on v5e/v6e.
    vmem_budget = min(vmem_cap * 3 // 4, 96 * 1024 * 1024)
    # VMEM bytes per batch element (lane): x rows are lane-padded to 128,
    # the (1, Bt) output tile is sublane-padded to 8 rows; both double-buffered.
    per_lane = 2 * (pl.cdiv(F, 128) * 128 * x_item) + 2 * (8 * 4)
    fixed = 2 * 1024 * 1024          # weights, per-chunk activations, compiler scratch
    max_tile = max(QUANT, ((vmem_budget - fixed) // per_lane) // QUANT * QUANT)
    max_tile = min(max_tile, 32768)

    n_tc = _num_tensorcores()
    if batch_tile is None:
        # Single step for small B on single-TC chips; even >=2 steps on 2-TC chips.
        min_steps = 2 if (n_tc >= 2 and B > QUANT) else 1
        steps = max(min_steps, pl.cdiv(B, max_tile))
        if n_tc >= 2 and steps % 2 == 1:
            steps += 1
        batch_tile = pl.cdiv(pl.cdiv(B, steps), QUANT) * QUANT
    else:
        batch_tile = max(QUANT, (int(batch_tile) // QUANT) * QUANT)
    batch_tile = min(batch_tile, max_tile)

    lane_chunk = max(128, min(int(lane_chunk), batch_tile))
    if batch_tile % lane_chunk != 0:
        lane_chunk = QUANT

    grid_n = pl.cdiv(B, batch_tile)
    Bp = grid_n * batch_tile         # padded output width (tiny (1, Bp) array only)

    # ---- parameter prep (once, in the wrapper) ----------------------------
    cdt = jnp.bfloat16 if use_bf16 else x.dtype
    xk = x if x.dtype == cdt else x.astype(cdt)
    w1k = w1.astype(cdt)
    w2k = w2.astype(cdt)
    w3k = w3.astype(cdt)
    w4tk = w4.T.astype(cdt)                        # (H/4, 1)
    b1c = b1.reshape(-1, 1).astype(jnp.float32)    # (H, 1)
    b2c = b2.reshape(-1, 1).astype(jnp.float32)    # (H/2, 1)
    b3c = b3.reshape(-1, 1).astype(jnp.float32)    # (H/4, 1)
    b4c = b4.reshape(1, 1).astype(jnp.float32)     # (1, 1)

    def full_spec(arr):
        return pl.BlockSpec(arr.shape, lambda i, _nd=arr.ndim: (0,) * _nd)

    flops = 2 * B * (F * H + H * (H // 2) + (H // 2) * (H // 4) + (H // 4))
    param_bytes = sum(int(p.size) * p.dtype.itemsize
                      for p in (w1k, b1c, w2k, b2c, w3k, b3c, w4tk, b4c))
    cost = pl.CostEstimate(
        flops=flops,
        transcendentals=0,
        bytes_accessed=int(B * F * x_item + Bp * 4 + param_bytes),
    )

    outT = pl.pallas_call(
        functools.partial(mlp_kernel, lane_chunk=lane_chunk),
        out_shape=jax.ShapeDtypeStruct((1, Bp), jnp.float32),
        grid_spec=pltpu.PrefetchScalarGridSpec(
            num_scalar_prefetch=0,
            grid=(grid_n,),
            in_specs=[
                # x in natural (B, F) layout; partial last tile handled by Pallas.
                pl.BlockSpec((batch_tile, F), lambda i: (i, 0)),
                full_spec(w1k), full_spec(b1c),
                full_spec(w2k), full_spec(b2c),
                full_spec(w3k), full_spec(b3c),
                full_spec(w4tk), full_spec(b4c),
            ],
            out_specs=pl.BlockSpec((1, batch_tile), lambda i: (0, i)),  # lane-dense
        ),
        compiler_params=pltpu.CompilerParams(
            dimension_semantics=("parallel",),
            vmem_limit_bytes=int(vmem_budget),
        ),
        cost_estimate=cost,
    )(xk, w1k, b1c, w2k, b2c, w3k, b3c, w4tk, b4c)

    return outT[:, :B].T                                              # (B, 1)


def init_params(key, num_GP_features, L1_dim_size):
    """PyTorch nn.Linear default init: U[-1/sqrt(in), 1/sqrt(in)], layout (out, in)."""
    dims = [
        (num_GP_features, L1_dim_size),
        (L1_dim_size, L1_dim_size // 2),
        (L1_dim_size // 2, L1_dim_size // 4),
        (L1_dim_size // 4, 1),
    ]
    params = {}
    for idx, (din, dout) in enumerate(dims, start=1):
        key, kw, kb = jax.random.split(key, 3)
        bound = 1.0 / (din ** 0.5)
        params[f"w{idx}"] = jax.random.uniform(
            kw, (dout, din), jnp.float32, minval=-bound, maxval=bound)
        params[f"b{idx}"] = jax.random.uniform(
            kb, (dout,), jnp.float32, minval=-bound, maxval=bound)
    return params


def reference_forward(x, params):
    h = jnp.maximum(x @ params["w1"].T + params["b1"], 0.0)
    h = jnp.maximum(h @ params["w2"].T + params["b2"], 0.0)
    h = jnp.maximum(h @ params["w3"].T + params["b3"], 0.0)
    return jnp.maximum(h @ params["w4"].T + params["b4"], 0.0)


if __name__ == "__main__":
    num_GP_features = 16
    L1_dim_size = 32

    key = jax.random.PRNGKey(0)
    key, kx1, kx2 = jax.random.split(key, 3)
    params = init_params(key, num_GP_features, L1_dim_size)

    # Case 1: ragged batch with an explicit small tile -> multi-step grid with a
    # partial (masked) last tile; exercises the no-copy ragged path.
    x1 = jax.random.normal(kx1, (1000, num_GP_features), jnp.float32)
    y1 = jax.block_until_ready(gp_nn_heuristic_forward(x1, params, batch_tile=512))
    y1_ref = reference_forward(x1, params)
    assert y1.shape == (1000, 1)
    assert jnp.allclose(y1, y1_ref, atol=1e-4, rtol=1e-4), "mismatch vs reference (ragged)"

    # Case 2: default generation-aware tiling (single step on v5e/v6e, even
    # split on 2-TC chips).
    x2 = jax.random.normal(kx2, (2048, num_GP_features), jnp.float32)
    y2 = jax.block_until_ready(gp_nn_heuristic_forward(x2, params))
    y2_ref = reference_forward(x2, params)
    assert y2.shape == (2048, 1)
    assert jnp.allclose(y2, y2_ref, atol=1e-4, rtol=1e-4), "mismatch vs reference (auto)"

    print("KERNEL_OK")
</pallas_src>

<mosaic_0001>
module attributes {stable_mosaic.version = 11 : i64} {
  func.func @mlp_kernel(%arg0: i32, %arg1: memref<512x16xf32, #tpu.memory_space<vmem>>, %arg2: memref<32x16xf32, #tpu.memory_space<vmem>>, %arg3: memref<32x1xf32, #tpu.memory_space<vmem>>, %arg4: memref<16x32xf32, #tpu.memory_space<vmem>>, %arg5: memref<16x1xf32, #tpu.memory_space<vmem>>, %arg6: memref<8x16xf32, #tpu.memory_space<vmem>>, %arg7: memref<8x1xf32, #tpu.memory_space<vmem>>, %arg8: memref<8x1xf32, #tpu.memory_space<vmem>>, %arg9: memref<1x1xf32, #tpu.memory_space<vmem>>, %arg10: memref<1x512xf32, #tpu.memory_space<vmem>>) attributes {dimension_semantics = [#tpu.dimension_semantics<parallel>], iteration_bounds = array<i64: 2>, scalar_prefetch = 0 : i64, scratch_operands = 0 : i64, tpu.core_type = #tpu.core_type<tc>, window_params = [{transform_indices = @transform_0, window_bounds = array<i64: 512, 16>}, {pipeline_mode = #tpu.pipeline_mode<synchronous>, transform_indices = @transform_1, window_bounds = array<i64: 32, 16>}, {pipeline_mode = #tpu.pipeline_mode<synchronous>, transform_indices = @transform_2, window_bounds = array<i64: 32, 1>}, {pipeline_mode = #tpu.pipeline_mode<synchronous>, transform_indices = @transform_3, window_bounds = array<i64: 16, 32>}, {pipeline_mode = #tpu.pipeline_mode<synchronous>, transform_indices = @transform_4, window_bounds = array<i64: 16, 1>}, {pipeline_mode = #tpu.pipeline_mode<synchronous>, transform_indices = @transform_5, window_bounds = array<i64: 8, 16>}, {pipeline_mode = #tpu.pipeline_mode<synchronous>, transform_indices = @transform_6, window_bounds = array<i64: 8, 1>}, {pipeline_mode = #tpu.pipeline_mode<synchronous>, transform_indices = @transform_7, window_bounds = array<i64: 8, 1>}, {pipeline_mode = #tpu.pipeline_mode<synchronous>, transform_indices = @transform_8, window_bounds = array<i64: 1, 1>}, {transform_indices = @transform_9, window_bounds = array<i64: 1, 512>}]} {
    %c0 = arith.constant 0 : index
    %c0_0 = arith.constant 0 : index
    %0 = vector.load %arg2[%c0, %c0_0] : memref<32x16xf32, #tpu.memory_space<vmem>>, vector<32x16xf32>
    %c0_1 = arith.constant 0 : index
    %c0_2 = arith.constant 0 : index
    %1 = vector.load %arg3[%c0_1, %c0_2] : memref<32x1xf32, #tpu.memory_space<vmem>>, vector<32x1xf32>
    %c0_3 = arith.constant 0 : index
    %c0_4 = arith.constant 0 : index
    %2 = vector.load %arg4[%c0_3, %c0_4] : memref<16x32xf32, #tpu.memory_space<vmem>>, vector<16x32xf32>
    %c0_5 = arith.constant 0 : index
    %c0_6 = arith.constant 0 : index
    %3 = vector.load %arg5[%c0_5, %c0_6] : memref<16x1xf32, #tpu.memory_space<vmem>>, vector<16x1xf32>
    %c0_7 = arith.constant 0 : index
    %c0_8 = arith.constant 0 : index
    %4 = vector.load %arg6[%c0_7, %c0_8] : memref<8x16xf32, #tpu.memory_space<vmem>>, vector<8x16xf32>
    %c0_9 = arith.constant 0 : index
    %c0_10 = arith.constant 0 : index
    %5 = vector.load %arg7[%c0_9, %c0_10] : memref<8x1xf32, #tpu.memory_space<vmem>>, vector<8x1xf32>
    %c0_11 = arith.constant 0 : index
    %c0_12 = arith.constant 0 : index
    %6 = vector.load %arg8[%c0_11, %c0_12] : memref<8x1xf32, #tpu.memory_space<vmem>>, vector<8x1xf32>
    %c0_13 = arith.constant 0 : index
    %c0_14 = arith.constant 0 : index
    %7 = vector.load %arg9[%c0_13, %c0_14] : memref<1x1xf32, #tpu.memory_space<vmem>>, vector<1x1xf32>
    %c0_15 = arith.constant 0 : index
    %c0_16 = arith.constant 0 : index
    %8 = vector.load %arg1[%c0_15, %c0_16] : memref<512x16xf32, #tpu.memory_space<vmem>>, vector<512x16xf32>
    %cst = arith.constant dense<0.000000e+00> : vector<32x512xf32>
    %9 = tpu.matmul %0, %8, %cst {dimension_numbers = #tpu.dot_dimension_numbers<[1], [1], [0], [0], [0, 0, 1, 0], [], []>} : vector<32x16xf32>, vector<512x16xf32>, vector<32x512xf32> -> vector<32x512xf32>
    %10 = vector.broadcast %1 : vector<32x1xf32> to vector<32x512xf32>
    %11 = arith.addf %9, %10 : vector<32x512xf32>
    %cst_17 = arith.constant 0.000000e+00 : f32
    %12 = vector.broadcast %cst_17 : f32 to vector<32x512xf32>
    %13 = arith.maximumf %11, %12 : vector<32x512xf32>
    %cst_18 = arith.constant dense<0.000000e+00> : vector<16x512xf32>
    %14 = tpu.matmul %2, %13, %cst_18 {dimension_numbers = #tpu.dot_dimension_numbers<[1], [0], [0], [1], [0, 0, 1, 1], [], []>} : vector<16x32xf32>, vector<32x512xf32>, vector<16x512xf32> -> vector<16x512xf32>
    %15 = vector.broadcast %3 : vector<16x1xf32> to vector<16x512xf32>
    %16 = arith.addf %14, %15 : vector<16x512xf32>
    %cst_19 = arith.constant 0.000000e+00 : f32
    %17 = vector.broadcast %cst_19 : f32 to vector<16x512xf32>
    %18 = arith.maximumf %16, %17 : vector<16x512xf32>
    %cst_20 = arith.constant dense<0.000000e+00> : vector<8x512xf32>
    %19 = tpu.matmul %4, %18, %cst_20 {dimension_numbers = #tpu.dot_dimension_numbers<[1], [0], [0], [1], [0, 0, 1, 1], [], []>} : vector<8x16xf32>, vector<16x512xf32>, vector<8x512xf32> -> vector<8x512xf32>
    %20 = vector.broadcast %5 : vector<8x1xf32> to vector<8x512xf32>
    %21 = arith.addf %19, %20 : vector<8x512xf32>
    %cst_21 = arith.constant 0.000000e+00 : f32
    %22 = vector.broadcast %cst_21 : f32 to vector<8x512xf32>
    %23 = arith.maximumf %21, %22 : vector<8x512xf32>
    %24 = vector.broadcast %6 : vector<8x1xf32> to vector<8x512xf32>
    %25 = arith.mulf %24, %23 : vector<8x512xf32>
    %cst_22 = arith.constant dense<0.000000e+00> : vector<512xf32>
    %26 = vector.multi_reduction <add>, %25, %cst_22 [0] : vector<8x512xf32> to vector<512xf32>
    %27 = vector.shape_cast %26 : vector<512xf32> to vector<1x512xf32>
    %28 = vector.broadcast %7 : vector<1x1xf32> to vector<1x512xf32>
    %29 = arith.addf %27, %28 : vector<1x512xf32>
    %cst_23 = arith.constant 0.000000e+00 : f32
    %30 = vector.broadcast %cst_23 : f32 to vector<1x512xf32>
    %31 = arith.maximumf %29, %30 : vector<1x512xf32>
    %c0_24 = arith.constant 0 : index
    %c0_25 = arith.constant 0 : index
    %32 = vector.load %arg10[%c0_24, %c0_25] : memref<1x512xf32, #tpu.memory_space<vmem>>, vector<1x512xf32>
    tpu.vector_store %arg10[%c0_24, %c0_25], %31 {strides = array<i32>} : memref<1x512xf32, #tpu.memory_space<vmem>>, vector<1x512xf32>,
    return
  }
  func.func @transform_0(%arg0: i32) -> (i32, i32) {
    %c0_i32 = arith.constant 0 : i32
    %c0_i32_0 = arith.constant 0 : i32
    return %arg0, %c0_i32 : i32, i32
  }
  func.func @transform_1(%arg0: i32) -> (i32, i32) {
    %c0_i32 = arith.constant 0 : i32
    %c0_i32_0 = arith.constant 0 : i32
    %c0_i32_1 = arith.constant 0 : i32
    return %c0_i32, %c0_i32_0 : i32, i32
  }
  func.func @transform_2(%arg0: i32) -> (i32, i32) {
    %c0_i32 = arith.constant 0 : i32
    %c0_i32_0 = arith.constant 0 : i32
    %c0_i32_1 = arith.constant 0 : i32
    return %c0_i32, %c0_i32_0 : i32, i32
  }
  func.func @transform_3(%arg0: i32) -> (i32, i32) {
    %c0_i32 = arith.constant 0 : i32
    %c0_i32_0 = arith.constant 0 : i32
    %c0_i32_1 = arith.constant 0 : i32
    return %c0_i32, %c0_i32_0 : i32, i32
  }
  func.func @transform_4(%arg0: i32) -> (i32, i32) {
    %c0_i32 = arith.constant 0 : i32
    %c0_i32_0 = arith.constant 0 : i32
    %c0_i32_1 = arith.constant 0 : i32
    return %c0_i32, %c0_i32_0 : i32, i32
  }
  func.func @transform_5(%arg0: i32) -> (i32, i32) {
    %c0_i32 = arith.constant 0 : i32
    %c0_i32_0 = arith.constant 0 : i32
    %c0_i32_1 = arith.constant 0 : i32
    return %c0_i32, %c0_i32_0 : i32, i32
  }
  func.func @transform_6(%arg0: i32) -> (i32, i32) {
    %c0_i32 = arith.constant 0 : i32
    %c0_i32_0 = arith.constant 0 : i32
    %c0_i32_1 = arith.constant 0 : i32
    return %c0_i32, %c0_i32_0 : i32, i32
  }
  func.func @transform_7(%arg0: i32) -> (i32, i32) {
    %c0_i32 = arith.constant 0 : i32
    %c0_i32_0 = arith.constant 0 : i32
    %c0_i32_1 = arith.constant 0 : i32
    return %c0_i32, %c0_i32_0 : i32, i32
  }
  func.func @transform_8(%arg0: i32) -> (i32, i32) {
    %c0_i32 = arith.constant 0 : i32
    %c0_i32_0 = arith.constant 0 : i32
    %c0_i32_1 = arith.constant 0 : i32
    return %c0_i32, %c0_i32_0 : i32, i32
  }
  func.func @transform_9(%arg0: i32) -> (i32, i32) {
    %c0_i32 = arith.constant 0 : i32
    %c0_i32_0 = arith.constant 0 : i32
    return %c0_i32, %arg0 : i32, i32
  }
}

</mosaic_0001>

<bundles_post_ra>
// kernel: tpu_custom_call.1
= control target key start
LH: loop header
LB: loop body
LE: loop exit
PB: predicated region body
PF: predicated region fallthrough
CT: control target
= control target key end

     0   :  { %s2112_s0 = inlined_call_operand.vmem [shape: f32[1000,16], index: 0, kind: input, shape index: {}]   ;;  %s2113_s1 = inlined_call_operand.vmem [shape: f32[32,16], index: 1, kind: input, shape index: {}]   ;;  %s2114_s2 = inlined_call_operand.vmem [shape: f32[32,1], index: 2, kind: input, shape index: {}]   ;;  %s2115_s3 = inlined_call_operand.vmem [shape: f32[16,32], index: 3, kind: input, shape index: {}]   ;;  %s2116_s4 = inlined_call_operand.vmem [shape: f32[16,1], index: 4, kind: input, shape index: {}]   ;;  %s2117_s5 = inlined_call_operand.vmem [shape: f32[8,16], index: 5, kind: input, shape index: {}]   ;;  %s2118_s6 = inlined_call_operand.vmem [shape: f32[8,1], index: 6, kind: input, shape index: {}]   ;;  %s2119_s7 = inlined_call_operand.vmem [shape: f32[8,1], index: 7, kind: input, shape index: {}]   ;;  %s2120_s8 = inlined_call_operand.<no memory space> [shape: f32[1,1], index: 8, kind: input, shape index: {}]   ;;  %s2121_s9 = inlined_call_operand.hbm [shape: f32[1,1024], index: 9, kind: output, shape index: {}]  }
   0x1   :  { %v14_v0 = vstv %s2120_s8 }
   0x2   :  { %15 = vst [vmem:[#allocation2] sm:$0x1] %v14_v0 }
   0x3   :  { %16 = vsyncpa [#allocation4], 0 }
   0x4   :  { %18 = vsyncpa [#allocation4 + $0x1], 0  ;;  %s1802_s11 = smov 0   ;;  %s1804_s12 = smov 0  }
   0x5   :  { %s1806_s13 = smov 0   ;;  %s1808_s14 = smov 0  }
   0x6 LB: > { %s1345_s8 = sadd.s32 4294967295, %s1743_s14   ;;  %s1346_s15 = sadd.s32 4294967294, %s1743_s14   ;;  %s1743_s14 = sphi %s1808_s14, %s2129_s14   ;;  %s1739_s13 = sphi %s1806_s13, %s2128_s13   ;;  %s1735_s12 = sphi %s1804_s12, %s2127_s12   ;;  %s1731_s11 = sphi %s1802_s11, %s2126_s11  }
   0x7   : > { %s1825_s16 = sadd.s32 1, %s1743_s14   ;;  %s225_s17 = sadd.s32 1, %s1739_s13 }
   0x8   : > { %s222_s18 = ssub.s32 %s1743_s14, %s1825_s16  ;;  %p235_p0 = scmp.ne.s32.totalorder %s1739_s13, %s1735_s12 }
   0x9   : > { %p223_p1 = scmp.eq.s32.totalorder %s222_s18, 0  ;;  %p236_p2 = scmp.eq.s32.totalorder %s1345_s8, 1 }
   0xa   : > { %p241_p3 = scmp.ne.s32.totalorder %s1735_s12, %s1731_s11  ;;  %p242_p4 = scmp.eq.s32.totalorder %s1346_s15, 1 }
   0xb   : > { %s1835_s19 = scalar_select %p223_p1, %s1739_s13, %s225_s17  }
   0xc   : > { %p1837_p5 = por %p236_p2, %p235_p0  ;;  %p1841_p6 = por %p242_p4, %p241_p3 }
   0xd   : > { %p1349_p7 = scmp.ge.s32.totalorder %s1743_s14, 1  ;;  %p301_p8 = scmp.lt.s32.totalorder %s1743_s14, 3 }
   0xf   : > { %p302_p9 = pnand %p1349_p7, %p301_p8 }
  0x10   : > { %s1847_s22 = sshll.u32 (!%p302_p9), %s1345_s8, 6  ;;  %vm456_vm0 = vcmask (!%p302_p9), 130048   ;;  %v1852_v1 = vld [vmem:[%s2113_s1] sm:$0xff] (!%p302_p9)  ;;  %v1745_v3 = vmov (!%p302_p9), 0   ;;  %v362_v4 = vld [vmem:[%s2114_s2 + $0x10] sm:$0xff] (!%p302_p9)  ;;  %v361_v5 = vld [vmem:[%s2114_s2 + $0x8] sm:$0xff] (!%p302_p9) }
  0x11   : > { %305 = sbr.rel (%p302_p9) target bundleno = 816 (0x330), region = 56  ;;  %p346_p10 = scmp.lt.s32.totalorder (!%p302_p9), %s1847_s22, 124  ;;  %1469 = vmatprep.mubr.msk.f32.mxu0 (!%p302_p9), %vm456_vm0, %v1852_v1  ;;  %1509 = vmatprep.mubr.msk.f32.mxu1 (!%p302_p9), %vm456_vm0, %v1852_v1  ;;  %v360_v2 = vld [vmem:[%s2114_s2] sm:$0xff] (!%p302_p9)  ;;  %v363_v6 = vld [vmem:[%s2114_s2 + $0x18] sm:$0xff] (!%p302_p9)  ;;  %vm1879_vm1 = vmpackc.low (!%p302_p9), %vm456_vm0, %vm456_vm0  ;;  %v1746_v7 = vmov (!%p302_p9), 0.0   ;;  %vm865_vm2 = vcmask (!%p302_p9), 261120  }
  0x12   : > { %1679 = vset.pattern.permute.xlu0 (!%p302_p9), %v1745_v3  ;;  %1680 = vset.pattern.permute.xlu1 (!%p302_p9), %v1745_v3  ;;  %v366_v11 = vld [vmem:[%s2116_s4] sm:$0xff] (!%p302_p9)  ;;  %v367_v28 = vld [vmem:[%s2116_s4 + $0x8] sm:$0xff] (!%p302_p9)  ;;  %s338_s8 = sand.u32 (!%p302_p9), 1, %s1735_s12   ;;  %s2070_s25 = scalar_lea.hbm (!%p302_p9), %s2121_s9, %s1847_s22 }
  0x13   : > { %438 = vperm.xlu0 (!%p302_p9), %1679, %v360_v2   ;;  %448 = vperm.xlu1 (!%p302_p9), %1680, %v362_v4   ;;  %v369_v27 = vld [vmem:[%s2118_s6] sm:$0xff] (!%p302_p9)  ;;  %s1350_s15 = sshll.u32 (!%p302_p9), %s338_s8, 2  ;;  %s1273_s26 = scalar_lea.sflag (!%p302_p9), [#allocation4], %s338_s8 }
  0x14   : > { %v370_v38 = vld [vmem:[%s2119_s7] sm:$0xff] (!%p302_p9)  ;;  %s1748_s28 = smov (!%p302_p9), [#allocation3]  }
  0x15   : > { %v371_v42 = vld [vmem:[#allocation2] sm:$0x1] (!%p302_p9) }
  0x17   : > { %443 = vperm.xlu0 (!%p302_p9), %1679, %v361_v5   ;;  %453 = vperm.xlu1 (!%p302_p9), %1680, %v363_v6  }
  0x18   : > { %s347_s29 = scalar_select %p346_p10, %s1847_s22, 124 }
  0x1a   : > { %s1352_s17 = sshll.u32 %s347_s29, 3  ;;  %s1685_s29 = sshll.u32 %s1748_s28, 4  ;;  %s1686_s29 = int_to_ptr.vmem [resolvable:$false] %s1685_s29 }
  0x1b   : > { %s1875_s24 = scalar_lea.vmem %s2112_s0, %s1352_s17  ;;  %857 = vperm.xlu0 %1679, %v366_v11   ;;  %862 = vperm.xlu1 %1680, %v367_v28   ;;  %s340_s17 = scalar_lea.vmem [#allocation3], %s1350_s15 }
  0x1c   : > { %v388_v8 = vld [vmem:[%s1875_s24 + $0x80] sm:$0xff]  ;;  %v389_v9 = vld [vmem:[%s1875_s24 + $0x88] sm:$0xff]  ;;  %v390_v20 = vld [vmem:[%s1875_s24 + $0x90] sm:$0xff]  ;;  %s1287_s18 = sshll.u32 %s340_s17, 4  ;;  %s1687_s30 = scalar_lea.vmem %s1686_s29, 128  ;;  %s2072_s18 = int_to_ptr.vmem [resolvable:$true] %s1287_s18 }
  0x1d   : > { %v420_v10 = vld [vmem:[%s1875_s24 + $0x180] sm:$0xff]  ;;  %v1517_v12 = vpack.c.bf16 %v389_v9, %v388_v8  ;;  %v421_v13 = vld [vmem:[%s1875_s24 + $0x188] sm:$0xff]  ;;  %v391_v22 = vld [vmem:[%s1875_s24 + $0x98] sm:$0xff]  ;;  %s1681_s27 = scalar_lea.vmem %s2072_s18, 64  ;;  %p1688_p0 = scmp.lt.s32.totalorder %s2072_s18, %s1686_s29 }
  0x1e   : > { %v372_v14 = vld [vmem:[%s1875_s24] sm:$0xff]  ;;  %v373_v15 = vld [vmem:[%s1875_s24 + $0x8] sm:$0xff]  ;;  %v1565_v16 = vpack.c.bf16 %v421_v13, %v420_v10  ;;  %v422_v23 = vld [vmem:[%s1875_s24 + $0x190] sm:$0xff]  ;;  %v1523_v25 = vpack.c.bf16 %v391_v22, %v390_v20  ;;  %p1682_p11 = scmp.ne.s32.totalorder %s2072_s18, %s1681_s27  ;;  %p1689_p1 = scmp.lt.s32.totalorder %s1687_s30, %s1681_s27 }
  0x1f   : > { %v1520_v17 = vpack.c.bf16 %v373_v15, %v372_v14  ;;  %v404_v18 = vld [vmem:[%s1875_s24 + $0x100] sm:$0xff]  ;;  %v405_v19 = vld [vmem:[%s1875_s24 + $0x108] sm:$0xff]  ;;  %1519 = vmatprep.subr.msk.bf16.mxu0 %vm1879_vm1, %v1517_v12  ;;  %v423_v24 = vld [vmem:[%s1875_s24 + $0x198] sm:$0xff]  ;;  %1036 = vperm.xlu0 %1679, %v369_v27  }
  0x20   : > { %v1568_v21 = vpack.c.bf16 %v405_v19, %v404_v18  ;;  %1567 = vmatprep.subr.msk.bf16.mxu1 %vm1879_vm1, %v1565_v16  ;;  %v1571_v26 = vpack.c.bf16 %v423_v24, %v422_v23  ;;  %v374_v29 = vld [vmem:[%s1875_s24 + $0x10] sm:$0xff]  ;;  %v375_v30 = vld [vmem:[%s1875_s24 + $0x18] sm:$0xff]  ;;  %v392_v33 = vld [vmem:[%s1875_s24 + $0xa0] sm:$0xff]  ;;  %1190 = vperm.xlu1 %1680, %v370_v38   ;;  %p1683_p12 = pnand %p1682_p11, %p1837_p5  ;;  %p1690_p2 = por %p1689_p1, %p1688_p0 }
  0x21   : > { %1522 = vmatpush3.bf16.xpose.msk.msra.mxu0 %vm1879_vm1, %v1520_v17  ;;  %v406_v31 = vld [vmem:[%s1875_s24 + $0x110] sm:$0xff]  ;;  %v407_v32 = vld [vmem:[%s1875_s24 + $0x118] sm:$0xff]  ;;  %v393_v34 = vld [vmem:[%s1875_s24 + $0xa8] sm:$0xff]  ;;  %v1526_v37 = vpack.c.bf16 %v375_v30, %v374_v29 }
  0x22   : > { %1570 = vmatpush3.bf16.xpose.msk.msra.mxu1 %vm1879_vm1, %v1568_v21  ;;  %1525 = vmatprep.subr.msk.bf16.mxu0 %vm1879_vm1, %v1523_v25  ;;  %v424_v35 = vld [vmem:[%s1875_s24 + $0x1a0] sm:$0xff]  ;;  %v425_v36 = vld [vmem:[%s1875_s24 + $0x1a8] sm:$0xff]  ;;  %v1574_v39 = vpack.c.bf16 %v407_v32, %v406_v31  ;;  %v1529_v40 = vpack.c.bf16 %v393_v34, %v392_v33  ;;  %v394_v47 = vld [vmem:[%s1875_s24 + $0xb0] sm:$0xff]  ;;  %p1684_p13 = pneg %p1683_p12 }
  0x23   : > { %1573 = vmatprep.subr.msk.bf16.mxu1 %vm1879_vm1, %v1571_v26  ;;  %v1577_v41 = vpack.c.bf16 %v425_v36, %v424_v35  ;;  %v376_v43 = vld [vmem:[%s1875_s24 + $0x20] sm:$0xff]  ;;  %v377_v44 = vld [vmem:[%s1875_s24 + $0x28] sm:$0xff]  ;;  %v395_v48 = vld [vmem:[%s1875_s24 + $0xb8] sm:$0xff]  ;;  %1223 = vperm.xlu0 %1679, %v371_v42  }
  0x24   : > { %v408_v45 = vld [vmem:[%s1875_s24 + $0x120] sm:$0xff]  ;;  %v409_v46 = vld [vmem:[%s1875_s24 + $0x128] sm:$0xff]  ;;  %v426_v49 = vld [vmem:[%s1875_s24 + $0x1b0] sm:$0xff]  ;;  %v1532_v51 = vpack.c.bf16 %v377_v44, %v376_v43  ;;  %v1535_v53 = vpack.c.bf16 %v395_v48, %v394_v47  ;;  %p1691_p3 = pnand %p1690_p2, %p1684_p13 }
  0x25   : > { %v427_v50 = vld [vmem:[%s1875_s24 + $0x1b8] sm:$0xff]  ;;  %v1580_v52 = vpack.c.bf16 %v409_v46, %v408_v45  ;;  %v378_v55 = vld [vmem:[%s1875_s24 + $0x30] sm:$0xff]  ;;  %v396_v59 = vld [vmem:[%s1875_s24 + $0xc0] sm:$0xff] }
  0x26   : > { %v1583_v54 = vpack.c.bf16 %v427_v50, %v426_v49  ;;  %v379_v56 = vld [vmem:[%s1875_s24 + $0x38] sm:$0xff]  ;;  %v410_v57 = vld [vmem:[%s1875_s24 + $0x130] sm:$0xff]  ;;  %v397_v60 = vld [vmem:[%s1875_s24 + $0xc8] sm:$0xff] }
  0x27   : > { %v411_v58 = vld [vmem:[%s1875_s24 + $0x138] sm:$0xff]  ;;  %v428_v61 = vld [vmem:[%s1875_s24 + $0x1c0] sm:$0xff]  ;;  %v429_v62 = vld [vmem:[%s1875_s24 + $0x1c8] sm:$0xff]  ;;  %v1538_v63 = vpack.c.bf16 %v379_v56, %v378_v55  ;;  %v1541_v2 = vpack.c.bf16 %v397_v60, %v396_v59 }
  0x28   : > { %v1586_v0 = vpack.c.bf16 %v411_v58, %v410_v57  ;;  %v1589_v3 = vpack.c.bf16 %v429_v62, %v428_v61  ;;  %v380_v4 = vld [vmem:[%s1875_s24 + $0x40] sm:$0xff]  ;;  %v381_v5 = vld [vmem:[%s1875_s24 + $0x48] sm:$0xff]  ;;  %v398_v9 = vld [vmem:[%s1875_s24 + $0xd0] sm:$0xff] }
  0x29   : > { %1528 = vmatpush3.bf16.xpose.msk.msra.mxu0 %vm1879_vm1, %v1526_v37  ;;  %v412_v6 = vld [vmem:[%s1875_s24 + $0x140] sm:$0xff]  ;;  %v413_v8 = vld [vmem:[%s1875_s24 + $0x148] sm:$0xff]  ;;  %v399_v10 = vld [vmem:[%s1875_s24 + $0xd8] sm:$0xff]  ;;  %v1544_v13 = vpack.c.bf16 %v381_v5, %v380_v4 }
  0x2a   : > { %1576 = vmatpush3.bf16.xpose.msk.msra.mxu1 %vm1879_vm1, %v1574_v39  ;;  %1531 = vmatprep.subr.msk.bf16.mxu0 %vm1879_vm1, %v1529_v40  ;;  %v430_v11 = vld [vmem:[%s1875_s24 + $0x1d0] sm:$0xff]  ;;  %v431_v12 = vld [vmem:[%s1875_s24 + $0x1d8] sm:$0xff]  ;;  %v1592_v14 = vpack.c.bf16 %v413_v8, %v412_v6  ;;  %v1547_v15 = vpack.c.bf16 %v399_v10, %v398_v9  ;;  %v400_v21 = vld [vmem:[%s1875_s24 + $0xe0] sm:$0xff] }
  0x2b   : > { %1579 = vmatprep.subr.msk.bf16.mxu1 %vm1879_vm1, %v1577_v41  ;;  %v1595_v16 = vpack.c.bf16 %v431_v12, %v430_v11  ;;  %v382_v17 = vld [vmem:[%s1875_s24 + $0x50] sm:$0xff]  ;;  %v383_v18 = vld [vmem:[%s1875_s24 + $0x58] sm:$0xff]  ;;  %v401_v22 = vld [vmem:[%s1875_s24 + $0xe8] sm:$0xff] }
  0x2c   : > { %v414_v19 = vld [vmem:[%s1875_s24 + $0x150] sm:$0xff]  ;;  %v415_v20 = vld [vmem:[%s1875_s24 + $0x158] sm:$0xff]  ;;  %v432_v23 = vld [vmem:[%s1875_s24 + $0x1e0] sm:$0xff]  ;;  %v1550_v25 = vpack.c.bf16 %v383_v18, %v382_v17  ;;  %v1553_v27 = vpack.c.bf16 %v401_v22, %v400_v21 }
  0x2d   : > { %v433_v24 = vld [vmem:[%s1875_s24 + $0x1e8] sm:$0xff]  ;;  %v1598_v26 = vpack.c.bf16 %v415_v20, %v414_v19  ;;  %v384_v29 = vld [vmem:[%s1875_s24 + $0x60] sm:$0xff]  ;;  %v402_v33 = vld [vmem:[%s1875_s24 + $0xf0] sm:$0xff] }
  0x2e   : > { %v1601_v28 = vpack.c.bf16 %v433_v24, %v432_v23  ;;  %v385_v30 = vld [vmem:[%s1875_s24 + $0x68] sm:$0xff]  ;;  %v416_v31 = vld [vmem:[%s1875_s24 + $0x160] sm:$0xff]  ;;  %v403_v34 = vld [vmem:[%s1875_s24 + $0xf8] sm:$0xff] }
  0x2f   : > { %v417_v32 = vld [vmem:[%s1875_s24 + $0x168] sm:$0xff]  ;;  %v434_v35 = vld [vmem:[%s1875_s24 + $0x1f0] sm:$0xff]  ;;  %v435_v36 = vld [vmem:[%s1875_s24 + $0x1f8] sm:$0xff]  ;;  %v1556_v37 = vpack.c.bf16 %v385_v30, %v384_v29  ;;  %v1559_v39 = vpack.c.bf16 %v403_v34, %v402_v33 }
  0x30   : > { %v1604_v38 = vpack.c.bf16 %v417_v32, %v416_v31  ;;  %v1607_v40 = vpack.c.bf16 %v435_v36, %v434_v35  ;;  %v386_v41 = vld [vmem:[%s1875_s24 + $0x70] sm:$0xff]  ;;  %v387_v42 = vld [vmem:[%s1875_s24 + $0x78] sm:$0xff]  ;;  %v357_v47 = vld [vmem:[%s2113_s1 + $0x8] sm:$0xff] }
  0x31   : > { %1534 = vmatpush3.bf16.xpose.msk.msra.mxu0 %vm1879_vm1, %v1532_v51  ;;  %v418_v43 = vld [vmem:[%s1875_s24 + $0x170] sm:$0xff]  ;;  %v419_v44 = vld [vmem:[%s1875_s24 + $0x178] sm:$0xff]  ;;  %v1562_v45 = vpack.c.bf16 %v387_v42, %v386_v41 }
  0x32   : > { %1582 = vmatpush3.bf16.xpose.msk.msra.mxu1 %vm1879_vm1, %v1580_v52  ;;  %1537 = vmatprep.subr.msk.bf16.mxu0 %vm1879_vm1, %v1535_v53  ;;  %v1610_v46 = vpack.c.bf16 %v419_v44, %v418_v43  ;;  %v358_v48 = vld [vmem:[%s2113_s1 + $0x10] sm:$0xff] }
  0x33   : > { %1585 = vmatprep.subr.msk.bf16.mxu1 %vm1879_vm1, %v1583_v54 }
  0x39   : > { %1540 = vmatpush3.bf16.xpose.msk.msra.mxu0 %vm1879_vm1, %v1538_v63 }
  0x3a   : > { %1588 = vmatpush3.bf16.xpose.msk.msra.mxu1 %vm1879_vm1, %v1586_v0  ;;  %1543 = vmatprep.subr.msk.bf16.mxu0 %vm1879_vm1, %v1541_v2 }
  0x3b   : > { %1591 = vmatprep.subr.msk.bf16.mxu1 %vm1879_vm1, %v1589_v3 }
  0x41   : > { %1546 = vmatpush3.bf16.xpose.msk.msra.mxu0 %vm1879_vm1, %v1544_v13 }
  0x42   : > { %1594 = vmatpush3.bf16.xpose.msk.msra.mxu1 %vm1879_vm1, %v1592_v14  ;;  %1549 = vmatprep.subr.msk.bf16.mxu0 %vm1879_vm1, %v1547_v15 }
  0x43   : > { %1597 = vmatprep.subr.msk.bf16.mxu1 %vm1879_vm1, %v1595_v16 }
  0x49   : > { %1552 = vmatpush3.bf16.xpose.msk.msra.mxu0 %vm1879_vm1, %v1550_v25 }
  0x4a   : > { %1600 = vmatpush3.bf16.xpose.msk.msra.mxu1 %vm1879_vm1, %v1598_v26  ;;  %1555 = vmatprep.subr.msk.bf16.mxu0 %vm1879_vm1, %v1553_v27 }
  0x4b   : > { %1603 = vmatprep.subr.msk.bf16.mxu1 %vm1879_vm1, %v1601_v28 }
  0x51   : > { %1558 = vmatpush3.bf16.xpose.msk.msra.mxu0 %vm1879_vm1, %v1556_v37 }
  0x52   : > { %1606 = vmatpush3.bf16.xpose.msk.msra.mxu1 %vm1879_vm1, %v1604_v38  ;;  %1561 = vmatprep.subr.msk.bf16.mxu0 %vm1879_vm1, %v1559_v39 }
  0x53   : > { %1609 = vmatprep.subr.msk.bf16.mxu1 %vm1879_vm1, %v1607_v40 }
  0x59   : > { %1564 = vmatpush3.bf16.xpose.msk.msra.mxu0 %vm1879_vm1, %v1562_v45 }
  0x5a   : > { %1612 = vmatpush3.bf16.xpose.msk.msra.mxu1 %vm1879_vm1, %v1610_v46 }
  0x60   : > { %1470 = vmatmul.mubr.msk.f32.vlgmr.msra.gmra.mrb[0].mxu0 %vm456_vm0, %v1852_v1 }
  0x61   : > { %1510 = vmatmul.mubr.msk.f32.vlgmr.msra.gmra.mrb[0].mxu1 %vm456_vm0, %v1852_v1  ;;  %1471 = vmatprep.mubr.msk.f32.mxu0 %vm456_vm0, %v357_v47  ;;  %v359_v1 = vld [vmem:[%s2113_s1 + $0x18] sm:$0xff] }
  0x62   : > { %1511 = vmatprep.mubr.msk.f32.mxu1 %vm456_vm0, %v357_v47 }
  0x64   : > { %1472 = vmatmul.mubr.msk.f32.gmra.mrb[2].mxu0 %vm456_vm0, %v357_v47 }
  0x65   : > { %1512 = vmatmul.mubr.msk.f32.gmra.mrb[2].mxu1 %vm456_vm0, %v357_v47  ;;  %1473 = vmatprep.mubr.msk.f32.mxu0 %vm456_vm0, %v358_v48  ;;  %v364_v47 = vld [vmem:[%s2115_s3] sm:$0xff] }
  0x66   : > { %1513 = vmatprep.mubr.msk.f32.mxu1 %vm456_vm0, %v358_v48 }
  0x68   : > { %1474 = vmatmul.mubr.msk.f32.gmra.mrb[4].mxu0 %vm456_vm0, %v358_v48 }
  0x69   : > { %1514 = vmatmul.mubr.msk.f32.gmra.mrb[4].mxu1 %vm456_vm0, %v358_v48  ;;  %1475 = vmatprep.mubr.msk.f32.mxu0 %vm456_vm0, %v359_v1  ;;  %v365_v48 = vld [vmem:[%s2115_s3 + $0x8] sm:$0xff] }
  0x6a   : > { %1515 = vmatprep.mubr.msk.f32.mxu1 %vm456_vm0, %v359_v1 }
  0x6c   : > { %1476 = vmatmul.mubr.msk.f32.gmra.mrb[6].mxu0 %vm456_vm0, %v359_v1 }
  0x6d   : > { %1516 = vmatmul.mubr.msk.f32.gmra.mrb[6].mxu1 %vm456_vm0, %v359_v1  ;;  %936 = vmatprep.mubr.f32.mxu0 %v1746_v7 }
  0x6e   : > { %1013 = vmatprep.mubr.f32.mxu1 %v1746_v7 }
  0x92   : > { %v439_v49 = vpop.permute.xlu0 %438  ;;  %v449_v63 = vpop.permute.xlu1 %448 }
  0x96   : > { %v444_v55 = vpop.permute.xlu0 %443  ;;  %v454_v23 = vpop.permute.xlu1 %453 }
 0x133   : > { %v727_v50 = vpop.f32.mrb[0].mxu0 }
 0x134   : > { %v816_v51 = vpop.f32.mrb[0].mxu1  ;;  %v729_v52 = vpop.f32.mrb[1].mxu0  ;;  %v728_v54 = vadd.f32 %v727_v50, %v439_v49 }
 0x135   : > { %v818_v53 = vpop.f32.mrb[1].mxu1  ;;  %v817_v56 = vadd.f32 %v816_v51, %v439_v49  ;;  %v730_v57 = vadd.f32 %v729_v52, %v439_v49  ;;  %v858_v51 = vpop.permute.xlu0 %857 }
 0x136   : > { %v819_v59 = vadd.f32 %v818_v53, %v439_v49  ;;  %v839_v4 = vmax.f32 %v728_v54, 0.0  ;;  %v863_v54 = vpop.permute.xlu1 %862 }
 0x137   : > { %v733_v58 = vpop.f32.mrb[2].mxu0  ;;  %v841_v8 = vmax.f32 %v817_v56, 0.0  ;;  %v840_v9 = vmax.f32 %v730_v57, 0.0 }
 0x138   : > { %v734_v60 = vadd.f32 %v733_v58, %v444_v55  ;;  %v822_v61 = vpop.f32.mrb[2].mxu1  ;;  %v735_v62 = vpop.f32.mrb[3].mxu0  ;;  %v842_v13 = vmax.f32 %v819_v59, 0.0 }
 0x139   : > { %v823_v0 = vadd.f32 %v822_v61, %v444_v55  ;;  %v736_v2 = vadd.f32 %v735_v62, %v444_v55  ;;  %v824_v3 = vpop.f32.mrb[3].mxu1 }
 0x13a   : > { %v843_v5 = vmax.f32 %v734_v60, 0.0  ;;  %v825_v6 = vadd.f32 %v824_v3, %v444_v55 }
 0x13b   : > { %v845_v10 = vmax.f32 %v823_v0, 0.0  ;;  %v844_v11 = vmax.f32 %v736_v2, 0.0  ;;  %v739_v12 = vpop.f32.mrb[4].mxu0 }
 0x13c   : > { %v1615_v14 = vpack.c.bf16 %v843_v5, %v839_v4  ;;  %v846_v15 = vmax.f32 %v825_v6, 0.0  ;;  %v828_v16 = vpop.f32.mrb[4].mxu1  ;;  %v741_v17 = vpop.f32.mrb[5].mxu0  ;;  %v740_v22 = vadd.f32 %v739_v12, %v449_v63 }
 0x13d   : > { %v1623_v18 = vpack.c.bf16 %v845_v10, %v841_v8  ;;  %v1613_v19 = vpack.c.bf16 %v844_v11, %v840_v9  ;;  %v830_v20 = vpop.f32.mrb[5].mxu1  ;;  %v829_v24 = vadd.f32 %v828_v16, %v449_v63  ;;  %v742_v25 = vadd.f32 %v741_v17, %v449_v63  ;;  %v1037_v16 = vpop.permute.xlu0 %1036 }
 0x13e   : > { %v1621_v21 = vpack.c.bf16 %v846_v15, %v842_v13  ;;  %v831_v27 = vadd.f32 %v830_v20, %v449_v63  ;;  %v847_v34 = vmax.f32 %v740_v22, 0.0  ;;  %v368_v15 = vld [vmem:[%s2117_s5] sm:$0xff] }
 0x13f   : > { %v745_v26 = vpop.f32.mrb[6].mxu0  ;;  %1614 = vmatprep.subr.bf16.mxu0 %v1613_v19  ;;  %v849_v37 = vmax.f32 %v829_v24, 0.0  ;;  %v848_v38 = vmax.f32 %v742_v25, 0.0 }
 0x140   : > { %v746_v28 = vadd.f32 %v745_v26, %v454_v23  ;;  %v834_v29 = vpop.f32.mrb[6].mxu1  ;;  %1622 = vmatprep.subr.bf16.mxu1 %v1621_v21  ;;  %v747_v30 = vpop.f32.mrb[7].mxu0  ;;  %1616 = vmatpush1.bf16.msra.mxu0 %v1615_v14  ;;  %v850_v41 = vmax.f32 %v831_v27, 0.0 }
 0x141   : > { %v835_v31 = vadd.f32 %v834_v29, %v454_v23  ;;  %v748_v32 = vadd.f32 %v747_v30, %v454_v23  ;;  %v836_v33 = vpop.f32.mrb[7].mxu1  ;;  %1624 = vmatpush1.bf16.msra.mxu1 %v1623_v18  ;;  %v1191_v26 = vpop.permute.xlu1 %1190  ;;  %v1226_v29 = vlaneseq }
 0x142   : > { %v851_v35 = vmax.f32 %v746_v28, 0.0  ;;  %v837_v36 = vadd.f32 %v836_v33, %v454_v23 }
 0x143   : > { %v853_v39 = vmax.f32 %v835_v31, 0.0  ;;  %v852_v40 = vmax.f32 %v748_v32, 0.0  ;;  %vm1269_vm3 = vcmp.lt.s32.totalorder %v1226_v29, 512 }
 0x144   : > { %v1619_v42 = vpack.c.bf16 %v851_v35, %v847_v34  ;;  %v854_v43 = vmax.f32 %v837_v36, 0.0 }
 0x145   : > { %v1627_v44 = vpack.c.bf16 %v853_v39, %v849_v37  ;;  %v1617_v45 = vpack.c.bf16 %v852_v40, %v848_v38  ;;  %v1227_v38 = vshrl.u32 %v1226_v29, 7 }
 0x146   : > { %v1625_v46 = vpack.c.bf16 %v854_v43, %v850_v41 }
 0x147   : > { %1618 = vmatprep.subr.bf16.mxu0 %v1617_v45 }
 0x148   : > { %1626 = vmatprep.subr.bf16.mxu1 %v1625_v46  ;;  %1620 = vmatpush1.bf16.msra.mxu0 %v1619_v42 }
 0x149   : > { %1628 = vmatpush1.bf16.msra.mxu1 %v1627_v44 }
 0x14b   : > { %1425 = vmatmul.mubr.msk.f32.vlgmr.msra.gmra.mrb[8].mxu0 %vm865_vm2, %v364_v47 }
 0x14c   : > { %1427 = vmatmul.mubr.msk.f32.vlgmr.msra.gmra.mrb[8].mxu1 %vm865_vm2, %v364_v47  ;;  %942 = vmatprep.mubr.f32.mxu0 %v1746_v7  ;;  %v1228_v47 = vsub.s32 0, %v1227_v38 }
 0x14d   : > { %1019 = vmatprep.mubr.f32.mxu1 %v1746_v7 }
 0x14f   : > { %1426 = vmatmul.mubr.msk.f32.gmra.mrb[10].mxu0 %vm865_vm2, %v365_v48 }
 0x150   : > { %1428 = vmatmul.mubr.msk.f32.gmra.mrb[10].mxu1 %vm865_vm2, %v365_v48  ;;  %1106 = vmatprep.mubr.f32.mxu0 %v1746_v7 }
 0x151   : > { %1177 = vmatprep.mubr.f32.mxu1 %v1746_v7 }
 0x21e   : > { %v938_v1 = vpop.f32.mrb[8].mxu0 }
 0x21f   : > { %v1015_v49 = vpop.f32.mrb[8].mxu1  ;;  %v940_v50 = vpop.f32.mrb[9].mxu0  ;;  %v939_v53 = vadd.f32 %v938_v1, %v858_v51 }
 0x220   : > { %v1017_v52 = vpop.f32.mrb[9].mxu1  ;;  %v1016_v55 = vadd.f32 %v1015_v49, %v858_v51  ;;  %v941_v56 = vadd.f32 %v940_v50, %v858_v51  ;;  %v1747_v49 = vmov 1966171168  }
 0x221   : > { %v1018_v58 = vadd.f32 %v1017_v52, %v858_v51  ;;  %v1026_v2 = vmax.f32 %v939_v53, 0.0  ;;  %v1245_v50 = vunpack.c.l.s4 %v1747_v49  ;;  %v1224_v51 = vpop.permute.xlu0 %1223 }
 0x222   : > { %v944_v57 = vpop.f32.mrb[10].mxu0  ;;  %v1028_v4 = vmax.f32 %v1016_v55, 0.0  ;;  %v1027_v5 = vmax.f32 %v941_v56, 0.0 }
 0x223   : > { %v945_v59 = vadd.f32 %v944_v57, %v863_v54  ;;  %v1021_v60 = vpop.f32.mrb[10].mxu1  ;;  %v946_v61 = vpop.f32.mrb[11].mxu0  ;;  %v1029_v9 = vmax.f32 %v1018_v58, 0.0  ;;  %v1229_v58 = vrot.slane %v1224_v51, %v1228_v47 }
 0x224   : > { %v1022_v62 = vadd.f32 %v1021_v60, %v863_v54  ;;  %v947_v63 = vadd.f32 %v946_v61, %v863_v54  ;;  %v1023_v0 = vpop.f32.mrb[11].mxu1  ;;  %v1246_v61 = vunpack.c.0.s8 %v1245_v50 }
 0x225   : > { %v1030_v3 = vmax.f32 %v945_v59, 0.0  ;;  %v1024_v7 = vadd.f32 %v1023_v0, %v863_v54 }
 0x226   : > { %v1032_v6 = vmax.f32 %v1022_v62, 0.0  ;;  %v1031_v8 = vmax.f32 %v947_v63, 0.0 }
 0x227   : > { %v1631_v10 = vpack.c.bf16 %v1030_v3, %v1026_v2  ;;  %v1033_v11 = vmax.f32 %v1024_v7, 0.0 }
 0x228   : > { %v1635_v12 = vpack.c.bf16 %v1032_v6, %v1028_v4  ;;  %v1629_v13 = vpack.c.bf16 %v1031_v8, %v1027_v5  ;;  %v1249_v6 = vsub.s32 %v1246_v61, %v1227_v38 }
 0x229   : > { %v1633_v14 = vpack.c.bf16 %v1033_v11, %v1029_v9 }
 0x22a   : > { %1630 = vmatprep.subr.bf16.mxu0 %v1629_v13 }
 0x22b   : > { %1634 = vmatprep.subr.bf16.mxu1 %v1633_v14  ;;  %1632 = vmatpush1.bf16.msra.mxu0 %v1631_v10 }
 0x22c   : > { %1636 = vmatpush1.bf16.msra.mxu1 %v1635_v12 }
 0x22e   : > { %1429 = vmatmul.mubr.msk.f32.vlgmr.msra.gmra.mrb[12].mxu0 %vm456_vm0, %v368_v15 }
 0x22f   : > { %1430 = vmatmul.mubr.msk.f32.vlgmr.msra.gmra.mrb[12].mxu1 %vm456_vm0, %v368_v15 }
 0x301   : > { %v1108_v17 = vpop.f32.mrb[12].mxu0 }
 0x302   : > { %v1109_v18 = vadd.f32 %v1108_v17, %v1037_v16  ;;  %v1179_v19 = vpop.f32.mrb[12].mxu1  ;;  %v1110_v20 = vpop.f32.mrb[13].mxu0 }
 0x303   : > { %v1180_v21 = vadd.f32 %v1179_v19, %v1037_v16  ;;  %v1111_v22 = vadd.f32 %v1110_v20, %v1037_v16  ;;  %v1181_v23 = vpop.f32.mrb[13].mxu1 }
 0x304   : > { %v1184_v24 = vmax.f32 %v1109_v18, 0.0  ;;  %v1182_v25 = vadd.f32 %v1181_v23, %v1037_v16 }
 0x305   : > { %v1186_v27 = vmax.f32 %v1180_v21, 0.0  ;;  %v1185_v28 = vmax.f32 %v1111_v22, 0.0 }
 0x306   : > { %v1193_v30 = vmul.f32 %v1191_v26, %v1184_v24  ;;  %v1187_v31 = vmax.f32 %v1182_v25, 0.0 }
 0x307   : > { %v1195_v32 = vmul.f32 %v1191_v26, %v1186_v27  ;;  %v1194_v33 = vmul.f32 %v1191_v26, %v1185_v28 }
 0x308   : > { %v1197_v34 = vrot.slane %v1193_v30, 4  ;;  %v1196_v35 = vmul.f32 %v1191_v26, %v1187_v31 }
 0x309   : > { %v1209_v36 = vrot.slane %v1195_v32, 4  ;;  %v1203_v37 = vrot.slane %v1194_v33, 4 }
 0x30a   : > { %v1198_v39 = vadd.f32 %v1197_v34, %v1193_v30  ;;  %v1215_v40 = vrot.slane %v1196_v35, 4 }
 0x30b   : > { %v1210_v41 = vadd.f32 %v1209_v36, %v1195_v32  ;;  %v1204_v42 = vadd.f32 %v1203_v37, %v1194_v33 }
 0x30c   : > { %v1199_v43 = vrot.slane %v1198_v39, 2  ;;  %v1216_v44 = vadd.f32 %v1215_v40, %v1196_v35 }
 0x30d   : > { %v1211_v45 = vrot.slane %v1210_v41, 2  ;;  %v1205_v46 = vrot.slane %v1204_v42, 2 }
 0x30e   : > { %v1200_v48 = vadd.f32 %v1199_v43, %v1198_v39  ;;  %v1217_v1 = vrot.slane %v1216_v44, 2 }
 0x30f   : > { %v1212_v52 = vadd.f32 %v1211_v45, %v1210_v41  ;;  %v1206_v53 = vadd.f32 %v1205_v46, %v1204_v42 }
 0x310   : > { %v1201_v54 = vrot.slane %v1200_v48, 1  ;;  %v1218_v55 = vadd.f32 %v1217_v1, %v1216_v44 }
 0x311   : > { %v1213_v56 = vrot.slane %v1212_v52, 1  ;;  %v1207_v57 = vrot.slane %v1206_v53, 1 }
 0x312   : > { %v1202_v59 = vadd.f32 %v1201_v54, %v1200_v48  ;;  %v1219_v60 = vrot.slane %v1218_v55, 1 }
 0x313   : > { %v1214_v62 = vadd.f32 %v1213_v56, %v1212_v52  ;;  %v1208_v63 = vadd.f32 %v1207_v57, %v1206_v53 }
 0x314   : > { %v1230_v0 = vadd.f32 %v1229_v58, %v1202_v59  ;;  %v1220_v2 = vadd.f32 %v1219_v60, %v1218_v55 }
 0x315   : > { %v1232_v3 = vadd.f32 %v1229_v58, %v1214_v62  ;;  %v1231_v7 = vadd.f32 %v1229_v58, %v1208_v63 }
 0x316   : > { %v1234_v4 = vmax.f32 %v1230_v0, 0.0  ;;  %v1233_v5 = vadd.f32 %v1229_v58, %v1220_v2 }
 0x317   : > { %v1236_v8 = vmax.f32 %v1232_v3, 0.0  ;;  %v1235_v9 = vmax.f32 %v1231_v7, 0.0 }
 0x318   : > { %v1237_v10 = vmax.f32 %v1233_v5, 0.0 }
 0x319   : > { %v1242_v11 = vcombine.low %v1234_v4, %v1235_v9 }
 0x31a   : > { %v1243_v12 = vcombine.low %v1236_v8, %v1237_v10 }
 0x31b   : > { %v1250_v13 = vrot.slane %v1242_v11, %v1249_v6 }
 0x31c   : > { %v1257_v14 = vrot.slane %v1243_v12, %v1249_v6 }
 0x31e   : > { %v1258_v15 = vcombine.low %v1250_v13, %v1257_v14 }
 0x320   : > { %v1265_v16 = vrot.slane %v1258_v15, %v1249_v6 }
 0x322   : > { %1271 = vst.msk [vmem:[%s340_s17] sm:$0xf] %vm1269_vm3, %v1265_v16 }
 0x323   : > { %1694 = shalt.err (!%p1691_p3)
}
 0x324   : > { %s1695_s22 = scalar_lea.hbm %s2070_s25, 64  ;;  %s1699_s15 = scalar_lea.hbm %s2121_s9, 128 }
 0x325   : > { %p1696_p4 = scmp.ne.s32.totalorder %s2070_s25, %s1695_s22  ;;  %p1700_p9 = scmp.lt.u32.totalorder %s2070_s25, %s2121_s9 }
 0x326   : > { %p1701_p10 = scmp.lt.u32.totalorder %s1699_s15, %s1695_s22  ;;  %p1703_p12 = scmp.lt.u32.totalorder %s1695_s22, %s2070_s25 }
 0x327   : > { %p1697_p7 = pnand %p1696_p4, %p1837_p5 }
 0x328   : > { %p1702_p11 = por %p1701_p10, %p1700_p9 }
 0x329   : > { %p1698_p8 = pneg %p1697_p7 }
 0x32a   : > { %p1704_p13 = por %p1703_p12, %p1702_p11 }
 0x32c   : > { %p1705_p0 = pnand %p1704_p13, %p1698_p8 }
 0x32e   : > { %1708 = shalt.err (!%p1705_p0)
}
 0x32f   : > { %1637 = dma.vmem_to_hbm [thread:$0]  (%p1837_p5), %s2072_s18, 64, %s2070_s25, %s1273_s26  }
 0x330 PF: > { %p1643_p1 = scmp.ge.s32.totalorder %s1743_s14, 2  ;;  %s1299_s24 = sand.u32 1, %s1731_s11  }
 0x331   : > { %s1300_s27 = scalar_lea.sflag [#allocation4], %s1299_s24 }
 0x332   : > { %p1640_p2 = pnand %p1643_p1, %p1841_p6 }
 0x334   : > { %1726 = dma.done.wait (!%p1640_p2), %s1300_s27, 64  }
 0x335   : > { %1728 = vsyncadd (!%p1640_p2), %s1300_s27, 4294967232  ;;  %p21_p3 = scmp.ge.s32.totalorder %s1825_s16, 4   ;;  %s2126_s11 = smov %s1735_s12 }
 0x336   : > { %s2127_s12 = smov %s1739_s13  ;;  %s2128_s13 = smov %s1835_s19 }
 0x337   : > { %s2129_s14 = smov %s1825_s16  ;;  %23 = sbr.rel (!%p21_p3) target bundleno = 6 (0x6), region = 91 }
 0x33e   :  { %1305 = vsyncpa [#allocation4], 1 }
 0x33f   :  { %1307 = vsyncpa [#allocation4 + $0x1], 1 }

</bundles_post_ra>
